<compile_context>
chip_gen: v7x
topology: tpu7x:2x2x1
jax: 0.10.0
libtpu: 0.0.40
codegen_flags: <defaults>
</compile_context>

<pallas_src>
import jax
import jax.numpy as jnp
from jax.experimental import pallas as pl
from jax.experimental.pallas import tpu as pltpu

_VP_GAIN = 1.7139588594436646

# ~2 MiB blocks: big enough to amortize the ~0.35 us per-grid-step overhead and
# saturate HBM, small enough that double-buffered in + out stays within every
# generation's default scoped VMEM.
_TARGET_BLOCK_BYTES = 2 * 1024 * 1024
_LANE = 128
# Widest lane dimensions to try (all multiples of 128).
_W_CANDIDATES = (8192, 4096, 2048, 1024, 512, 256, 128)


def _vprelu_kernel(x_ref, o_ref):
    x = x_ref[...]
    o_ref[...] = jnp.maximum(x, 0) * jnp.asarray(_VP_GAIN, x.dtype)


def vprelu(x: jnp.ndarray) -> jnp.ndarray:
    """Applies relu(x) * 1.7139588594436646 elementwise via a Pallas TPU kernel."""
    orig_shape = x.shape
    orig_dtype = x.dtype
    total = x.size

    # ---- choose a wide lane dimension W (multiple of 128) ----
    # Prefer the widest W that divides the element count so no padding is needed.
    W = None
    for cand in _W_CANDIDATES:
        if total % cand == 0:
            W = cand
            break

    x_flat = x.reshape(-1)
    if W is None:
        # Ragged size: pad up to a multiple of 128 lanes (rare; small tensors).
        W = _LANE
        padded_total = ((total + W - 1) // W) * W
        x_flat = jnp.pad(x_flat, (0, padded_total - total))
    else:
        padded_total = total

    rows = padded_total // W
    x2d = x_flat.reshape(rows, W)

    # ---- choose the row tile: ~2 MiB per block, multiple of 8 sublanes ----
    dtype_bytes = jnp.dtype(orig_dtype).itemsize
    tile_rows = (_TARGET_BLOCK_BYTES // (W * dtype_bytes)) // 8 * 8
    tile_rows = max(8, tile_rows)
    if tile_rows >= rows:
        # Whole slab fits in one block; full-extent block shape is always legal.
        tile_rows = rows

    grid = (pl.cdiv(rows, tile_rows),)

    out2d = pl.pallas_call(
        _vprelu_kernel,
        out_shape=jax.ShapeDtypeStruct((rows, W), orig_dtype),
        grid_spec=pltpu.PrefetchScalarGridSpec(
            num_scalar_prefetch=0,
            grid=grid,
            in_specs=[pl.BlockSpec((tile_rows, W), lambda i: (i, 0))],
            out_specs=pl.BlockSpec((tile_rows, W), lambda i: (i, 0)),
        ),
        compiler_params=pltpu.CompilerParams(
            dimension_semantics=("parallel",),
        ),
    )(x2d)

    out_flat = out2d.reshape(-1)
    if padded_total != total:
        out_flat = out_flat[:total]
    return out_flat.reshape(orig_shape)


if __name__ == "__main__":
    key = jax.random.PRNGKey(0)
    # NCHW input, small shapes: batch=2, channels=4, spatial=16x16
    x = jax.random.normal(key, (2, 4, 16, 16), dtype=jnp.float32)

    y = vprelu(x)
    y = jax.block_until_ready(y)

    # Reference check in plain JAX
    y_ref = jnp.maximum(x, 0.0) * _VP_GAIN
    assert y.shape == x.shape and y.dtype == x.dtype
    assert jnp.allclose(y, y_ref, atol=1e-6, rtol=1e-6)

    print("KERNEL_OK")
</pallas_src>

<mosaic_0001>
module attributes {stable_mosaic.version = 11 : i64} {
  func.func @_vprelu_kernel(%arg0: i32, %arg1: memref<1x2048xf32, #tpu.memory_space<vmem>>, %arg2: memref<1x2048xf32, #tpu.memory_space<vmem>>) attributes {dimension_semantics = [#tpu.dimension_semantics<parallel>], iteration_bounds = array<i64: 1>, scalar_prefetch = 0 : i64, scratch_operands = 0 : i64, tpu.core_type = #tpu.core_type<tc>, window_params = [{transform_indices = @transform_0, window_bounds = array<i64: 1, 2048>}, {transform_indices = @transform_1, window_bounds = array<i64: 1, 2048>}]} {
    %c0 = arith.constant 0 : index
    %c0_0 = arith.constant 0 : index
    %0 = vector.load %arg1[%c0, %c0_0] : memref<1x2048xf32, #tpu.memory_space<vmem>>, vector<1x2048xf32>
    %cst = arith.constant 0.000000e+00 : f32
    %1 = vector.broadcast %cst : f32 to vector<1x2048xf32>
    %2 = arith.maximumf %0, %1 : vector<1x2048xf32>
    %cst_1 = arith.constant 1.71395886 : f32
    %3 = vector.broadcast %cst_1 : f32 to vector<1x2048xf32>
    %4 = arith.mulf %2, %3 : vector<1x2048xf32>
    %c0_2 = arith.constant 0 : index
    %c0_3 = arith.constant 0 : index
    %5 = vector.load %arg2[%c0_2, %c0_3] : memref<1x2048xf32, #tpu.memory_space<vmem>>, vector<1x2048xf32>
    tpu.vector_store %arg2[%c0_2, %c0_3], %4 {strides = array<i32>} : memref<1x2048xf32, #tpu.memory_space<vmem>>, vector<1x2048xf32>,
    return
  }
  func.func @transform_0(%arg0: i32) -> (i32, i32) {
    %c0_i32 = arith.constant 0 : i32
    %c0_i32_0 = arith.constant 0 : i32
    return %arg0, %c0_i32 : i32, i32
  }
  func.func @transform_1(%arg0: i32) -> (i32, i32) {
    %c0_i32 = arith.constant 0 : i32
    %c0_i32_0 = arith.constant 0 : i32
    return %arg0, %c0_i32 : i32, i32
  }
}

</mosaic_0001>

<bundles_post_ra>
// kernel: tpu_custom_call.1
= control target key start
LH: loop header
LB: loop body
LE: loop exit
PB: predicated region body
PF: predicated region fallthrough
CT: control target
= control target key end

     0   :  { %6 = vsyncpa [#allocation3], 0  ;;  %s130_s0 = inlined_call_operand.hbm [shape: f32[1,2048], index: 0, kind: input, shape index: {}]   ;;  %s131_s1 = inlined_call_operand.hbm [shape: f32[1,2048], index: 1, kind: output, shape index: {}]  }
   0x1   :  { %7 = vsyncpa [#allocation4], 0  ;;  %s94_s6 = smov [#allocation2]   ;;  %s46_s10 = scalar_lea.hbm %s130_s0, 256 }
   0x2   :  { %s14_s7 = sshll.u32 %s94_s6, 4  ;;  %p47_p0 = scmp.ne.s32.totalorder %s130_s0, %s46_s10  ;;  %s15_s7 = int_to_ptr.vmem [resolvable:$true] %s14_s7 }
   0x3   :  { %p50_p1 = scmp.lt.u32.totalorder %s46_s10, %s130_s0 }
   0x5   :  { %p52_p2 = pnand %p50_p1, %p47_p0 }
   0x7   :  { %55 = shalt.err (!%p52_p2)
}
   0x8   :  { %s56_s15 = scalar_lea.vmem %s15_s7, 256  ;;  %p61_p4 = scmp.lt.s32.totalorder %s15_s7, %s15_s7 }
   0x9   :  { %p57_p3 = scmp.ne.s32.totalorder %s15_s7, %s56_s15  ;;  %p62_p5 = scmp.lt.s32.totalorder %s56_s15, %s56_s15 }
   0xb   :  { %p63_p6 = por %p62_p5, %p61_p4 }
   0xd   :  { %p64_p7 = pnand %p63_p6, %p57_p3 }
   0xf   :  { %67 = shalt.err (!%p64_p7)
}
  0x10   :  { %17 = dma.hbm_to_vmem [thread:$0]  %s130_s0, 256, %s15_s7, [#allocation3]  }
  0x11   :  { %90 = dma.done.wait [#allocation3], 256  }
  0x12   :  { %91 = vsyncadd [#allocation3], 4294967040  ;;  %v21_v0 = vld [vmem:[#allocation2] sm:$0xff]  ;;  %v22_v1 = vld [vmem:[#allocation2 + $0x8] sm:$0xff]  ;;  %s95_s18 = smov [#allocation5]  }
  0x13   :  { %s35_s19 = sshll.u32 %s95_s18, 4  ;;  %v23_v2 = vmax.f32 %v21_v0, 0.0  ;;  %v24_v3 = vmax.f32 %v22_v1, 0.0  ;;  %s36_s19 = int_to_ptr.vmem [resolvable:$true] %s35_s19 }
  0x14   :  { %s68_s20 = scalar_lea.vmem %s36_s19, 256  ;;  %p73_p9 = scmp.lt.s32.totalorder %s36_s19, %s36_s19 }
  0x15   :  { %v25_v4 = vmul.f32 1.7139589, %v23_v2  ;;  %v26_v5 = vmul.f32 1.7139589, %v24_v3  ;;  %p69_p8 = scmp.ne.s32.totalorder %s36_s19, %s68_s20  ;;  %p74_p10 = scmp.lt.s32.totalorder %s68_s20, %s68_s20 }
  0x17   :  { %27 = vst [vmem:[#allocation5] sm:$0xff] %v25_v4  ;;  %28 = vst [vmem:[#allocation5 + $0x8] sm:$0xff] %v26_v5  ;;  %p75_p11 = por %p74_p10, %p73_p9 }
  0x19   :  { %p76_p12 = pnand %p75_p11, %p69_p8 }
  0x1b   :  { %79 = shalt.err (!%p76_p12)
}
  0x1c   :  { %s80_s22 = scalar_lea.hbm %s131_s1, 256 }
  0x1d   :  { %p81_p13 = scmp.ne.s32.totalorder %s131_s1, %s80_s22  ;;  %p84_p0 = scmp.lt.u32.totalorder %s80_s22, %s131_s1 }
  0x1f   :  { %p86_p1 = pnand %p84_p0, %p81_p13 }
  0x21   :  { %89 = shalt.err (!%p86_p1)
}
  0x22   :  { %38 = dma.vmem_to_hbm [thread:$0]  %s36_s19, 256, %s131_s1, [#allocation4]  }
  0x23   :  { %92 = dma.done.wait [#allocation4], 256  }
  0x24   :  { %93 = vsyncadd [#allocation4], 4294967040 }
  0x25   :  { %42 = vsyncpa [#allocation3], 1 }
  0x26   :  { %43 = vsyncpa [#allocation4], 1 }

</bundles_post_ra>
